<compile_context>
chip_gen: v5e
topology: v5e:2x2
jax: 0.10.0
libtpu: 0.0.40
codegen_flags: <defaults>
</compile_context>

<pallas_src>
import functools
import math

import jax
import jax.numpy as jnp
import numpy as np
from jax import lax
from jax.experimental import pallas as pl
from jax.experimental.pallas import tpu as pltpu

RELATIVE_POSITION = "relative_position"


def _round_up(x, m):
    return (x + m - 1) // m * m


# ----------------------------------------------------------------------------
# Kernels
# ----------------------------------------------------------------------------
def _gather_embed_kernel(ids_ref, *refs, embed_scale, add_positions, tile_s, s_pad):
    """Gather TILE_S token rows from HBM via per-row DMA, scale, add positions."""
    if add_positions:
        pos_ref, tok_hbm, out_ref, gbuf, sems = refs
    else:
        tok_hbm, out_ref, gbuf, sems = refs
        pos_ref = None

    b = pl.program_id(0)
    sb = pl.program_id(1)
    base = b * s_pad + sb * tile_s

    # Issue all TILE_S row DMAs first (kept in flight concurrently).
    @pl.loop(0, tile_s)
    def _issue(r):
        tok_id = ids_ref[base + r]
        pltpu.make_async_copy(
            tok_hbm.at[pl.ds(tok_id, 1), :],
            gbuf.at[pl.ds(r, 1), :],
            sems.at[r],
        ).start()

    # Then wait for all of them.
    @pl.loop(0, tile_s)
    def _wait(r):
        pltpu.make_async_copy(
            tok_hbm.at[pl.ds(0, 1), :],
            gbuf.at[pl.ds(r, 1), :],
            sems.at[r],
        ).wait()

    x = gbuf[...].astype(jnp.float32) * embed_scale
    if pos_ref is not None:
        x = x + pos_ref[...].astype(jnp.float32)
    out_ref[...] = x[None].astype(out_ref.dtype)


def _scale_add_kernel(*refs, embed_scale, add_positions):
    """inputs_embeds path: elementwise scale (+ optional position add)."""
    if add_positions:
        x_ref, pos_ref, out_ref = refs
    else:
        x_ref, out_ref = refs
        pos_ref = None
    x = x_ref[...].astype(jnp.float32) * embed_scale
    if pos_ref is not None:
        x = x + pos_ref[...][None, :, :].astype(jnp.float32)
    out_ref[...] = x.astype(out_ref.dtype)


# ----------------------------------------------------------------------------
# Wrappers
# ----------------------------------------------------------------------------
def _position_slab(embed_positions, seq_len, s_pad, use_cache, pos_idx):
    """(s_pad, D) position slab matching the PyTorch pos_ids slicing."""
    _, D = embed_positions.shape
    if use_cache and pos_idx is not None:
        # pos_ids[pos_idx : pos_idx + 1] -> single row, broadcast over seq.
        # pos_idx is consumed as a traced scalar (no recompile per decode step).
        idx = jnp.asarray(pos_idx, jnp.int32)
        row = lax.dynamic_slice(embed_positions, (idx, jnp.int32(0)), (1, D))
        return jnp.broadcast_to(row, (s_pad, D)).astype(embed_positions.dtype)
    slab = jnp.zeros((s_pad, D), embed_positions.dtype)
    return slab.at[:seq_len].set(embed_positions[:seq_len])


def _embed_from_ids(input_ids, embed_tokens, pos_slab, *, embed_scale,
                    add_positions, tile_s, s_pad):
    B, S = input_ids.shape
    V, D = embed_tokens.shape
    n_s = s_pad // tile_s

    # Pad ids along seq to a tile multiple (pad rows gather id 0; sliced away).
    ids = jnp.zeros((B, s_pad), jnp.int32).at[:, :S].set(input_ids.astype(jnp.int32))
    ids_flat = ids.reshape(-1)

    kernel = functools.partial(
        _gather_embed_kernel,
        embed_scale=float(embed_scale),
        add_positions=add_positions,
        tile_s=tile_s,
        s_pad=s_pad,
    )

    in_specs = []
    inputs = []
    if add_positions:
        # Contiguous position slab; block depends only on the seq-tile axis.
        in_specs.append(pl.BlockSpec((tile_s, D), lambda b, s, ids: (s, 0)))
        inputs.append(pos_slab)
    # Vocab table stays in HBM; rows are gathered with manual DMA.
    in_specs.append(pl.BlockSpec(memory_space=pl.ANY))
    inputs.append(embed_tokens)

    grid_spec = pltpu.PrefetchScalarGridSpec(
        num_scalar_prefetch=1,  # flattened ids land in SMEM
        grid=(B, n_s),
        in_specs=in_specs,
        out_specs=pl.BlockSpec((1, tile_s, D), lambda b, s, ids: (b, s, 0)),
        scratch_shapes=[
            pltpu.VMEM((tile_s, D), embed_tokens.dtype),
            pltpu.SemaphoreType.DMA((tile_s,)),
        ],
    )

    out = pl.pallas_call(
        kernel,
        out_shape=jax.ShapeDtypeStruct((B, s_pad, D), embed_tokens.dtype),
        grid_spec=grid_spec,
        compiler_params=pltpu.CompilerParams(
            dimension_semantics=("parallel", "parallel"),
        ),
    )(ids_flat, *inputs)
    return out[:, :S, :]


def _embed_from_embeds(inputs_embeds, pos_slab, *, embed_scale, add_positions,
                       tile_s, s_pad):
    B, S, D = inputs_embeds.shape
    n_s = s_pad // tile_s
    x = jnp.zeros((B, s_pad, D), inputs_embeds.dtype).at[:, :S, :].set(inputs_embeds)

    kernel = functools.partial(
        _scale_add_kernel,
        embed_scale=float(embed_scale),
        add_positions=add_positions,
    )

    in_specs = [pl.BlockSpec((1, tile_s, D), lambda b, s: (b, s, 0))]
    inputs = [x]
    if add_positions:
        in_specs.append(pl.BlockSpec((tile_s, D), lambda b, s: (s, 0)))
        inputs.append(pos_slab)

    out = pl.pallas_call(
        kernel,
        out_shape=jax.ShapeDtypeStruct((B, s_pad, D), inputs_embeds.dtype),
        grid=(B, n_s),
        in_specs=in_specs,
        out_specs=pl.BlockSpec((1, tile_s, D), lambda b, s: (b, s, 0)),
        compiler_params=pltpu.CompilerParams(
            dimension_semantics=("parallel", "parallel"),
        ),
    )(*inputs)
    return out[:, :S, :]


def bart_embeds_forward(input_ids=None, inputs_embeds=None, *, embed_tokens,
                        embed_positions=None, embed_scale=1.0,
                        type_attn="absolute", use_cache=False, pos_idx=None,
                        max_tokens_per_step=256):
    """Pallas implementation of BartEmbeds.forward."""
    if input_ids is None and inputs_embeds is None:
        raise ValueError("one of input_ids / inputs_embeds is required")

    add_positions = type_attn != RELATIVE_POSITION
    if input_ids is not None:
        B, S = input_ids.shape
        D = embed_tokens.shape[1]
    else:
        B, S, D = inputs_embeds.shape

    # Tokens per grid step: multiple of 8 (sublane-dense), capped at 256.
    tile_s = min(int(max_tokens_per_step), _round_up(S, 8))
    s_pad = _round_up(S, tile_s)

    pos_slab = None
    if add_positions:
        pos_slab = _position_slab(embed_positions, S, s_pad, use_cache, pos_idx)

    if input_ids is not None:
        return _embed_from_ids(
            input_ids, embed_tokens, pos_slab,
            embed_scale=embed_scale, add_positions=add_positions,
            tile_s=tile_s, s_pad=s_pad)
    return _embed_from_embeds(
        inputs_embeds, pos_slab,
        embed_scale=embed_scale, add_positions=add_positions,
        tile_s=tile_s, s_pad=s_pad)


# ----------------------------------------------------------------------------
# Self-test
# ----------------------------------------------------------------------------
if __name__ == "__main__":
    # Deterministic synthetic parameters (mirrors nn.Embedding init with
    # std=0.02 and a zeroed padding_idx row).
    V = 64            # num_embeddings (vocab)
    D = 128           # embedding_dim
    P = 32            # max_position_embeddings
    PAD = 1           # padding_idx
    B, S = 2, 8       # batch, seq_len
    embed_scale = math.sqrt(D)

    key = jax.random.PRNGKey(0)
    k_tok, k_pos, k_ids, k_emb = jax.random.split(key, 4)

    tok_w = 0.02 * jax.random.normal(k_tok, (V, D), dtype=jnp.float32)
    tok_w = tok_w.at[PAD].set(0.0)
    pos_w = 0.02 * jax.random.normal(k_pos, (P, D), dtype=jnp.float32)
    pos_w = pos_w.at[PAD].set(0.0)

    input_ids = jax.random.randint(k_ids, (B, S), 0, V, dtype=jnp.int32)

    # 1) Absolute-position prefill path.
    out = jax.block_until_ready(bart_embeds_forward(
        input_ids=input_ids, embed_tokens=tok_w, embed_positions=pos_w,
        embed_scale=embed_scale, type_attn="absolute"))
    ref = jnp.take(tok_w, input_ids, axis=0) * embed_scale + pos_w[:S][None, :, :]
    assert out.shape == (B, S, D)
    assert np.allclose(np.asarray(out), np.asarray(ref), atol=1e-5, rtol=1e-5)

    # 2) Relative-position branch (no position add, no position input DMA).
    out_rel = jax.block_until_ready(bart_embeds_forward(
        input_ids=input_ids, embed_tokens=tok_w, embed_positions=pos_w,
        embed_scale=embed_scale, type_attn=RELATIVE_POSITION))
    ref_rel = jnp.take(tok_w, input_ids, axis=0) * embed_scale
    assert np.allclose(np.asarray(out_rel), np.asarray(ref_rel), atol=1e-5, rtol=1e-5)

    # 3) use_cache decode step (S == 1); pos_idx is a traced scalar.
    dec_ids = input_ids[:, :1]
    out_dec = jax.block_until_ready(bart_embeds_forward(
        input_ids=dec_ids, embed_tokens=tok_w, embed_positions=pos_w,
        embed_scale=embed_scale, type_attn="absolute",
        use_cache=True, pos_idx=jnp.int32(5)))
    ref_dec = jnp.take(tok_w, dec_ids, axis=0) * embed_scale + pos_w[5][None, None, :]
    assert np.allclose(np.asarray(out_dec), np.asarray(ref_dec), atol=1e-5, rtol=1e-5)

    # 4) inputs_embeds path (pre-computed embeddings: scale + position add).
    x_emb = jax.random.normal(k_emb, (B, S, D), dtype=jnp.float32)
    out_emb = jax.block_until_ready(bart_embeds_forward(
        inputs_embeds=x_emb, embed_tokens=tok_w, embed_positions=pos_w,
        embed_scale=embed_scale, type_attn="absolute"))
    ref_emb = x_emb * embed_scale + pos_w[:S][None, :, :]
    assert np.allclose(np.asarray(out_emb), np.asarray(ref_emb), atol=1e-5, rtol=1e-5)

    print("KERNEL_OK")
</pallas_src>

<mosaic_0001>
module attributes {stable_mosaic.version = 11 : i64} {
  func.func @_gather_embed_kernel(%arg0: i32, %arg1: i32, %arg2: memref<16xi32, #tpu.memory_space<smem>>, %arg3: memref<8x128xf32, #tpu.memory_space<vmem>>, %arg4: memref<64x128xf32, #tpu.memory_space<any>>, %arg5: memref<1x8x128xf32, #tpu.memory_space<vmem>>, %arg6: memref<8x128xf32, #tpu.memory_space<vmem>>, %arg7: memref<8x!tpu.dma_semaphore, #tpu.memory_space<semaphore_mem>>) attributes {dimension_semantics = [#tpu.dimension_semantics<parallel>, #tpu.dimension_semantics<parallel>], iteration_bounds = array<i64: 2, 1>, scalar_prefetch = 1 : i64, scratch_operands = 2 : i64, tpu.core_type = #tpu.core_type<tc>, window_params = [{transform_indices = @transform_0, window_bounds = array<i64: 8, 128>}, {}, {transform_indices = @transform_2, window_bounds = array<i64: 1, 8, 128>}]} {
    %c8_i32 = arith.constant 8 : i32
    %0 = arith.muli %arg0, %c8_i32 : i32
    %c8_i32_0 = arith.constant 8 : i32
    %1 = arith.muli %arg1, %c8_i32_0 : i32
    %2 = arith.addi %0, %1 : i32
    %c0_i32 = arith.constant 0 : i32
    %c8_i32_1 = arith.constant 8 : i32
    %3 = arith.addi %c0_i32, %c8_i32_1 : i32
    %c1_i32 = arith.constant 1 : i32
    scf.for %arg8 = %c0_i32 to %3 step %c1_i32  : i32 {
      %c1_i32_13 = arith.constant 1 : i32
      %12 = arith.muli %arg8, %c1_i32_13 : i32
      %c0_i32_14 = arith.constant 0 : i32
      %13 = arith.addi %c0_i32_14, %12 : i32
      %14 = arith.addi %2, %13 : i32
      %15 = arith.index_cast %14 : i32 to index
      %16 = memref.load %arg2[%15] : memref<16xi32, #tpu.memory_space<smem>>
      %c0_i32_15 = arith.constant 0 : i32
      %17 = tpu.memref_slice %arg4[%16, %c0_i32_15] : memref<64x128xf32, #tpu.memory_space<any>> -> memref<1x128xf32, #tpu.memory_space<any>>
      %c0_i32_16 = arith.constant 0 : i32
      %18 = tpu.memref_slice %arg6[%13, %c0_i32_16] : memref<8x128xf32, #tpu.memory_space<vmem>> -> memref<1x128xf32, #tpu.memory_space<vmem>>
      %19 = tpu.memref_slice %arg7[%13] : memref<8x!tpu.dma_semaphore, #tpu.memory_space<semaphore_mem>> -> memref<1x!tpu.dma_semaphore, #tpu.memory_space<semaphore_mem>>
      %20 = tpu.memref_squeeze %19 : memref<1x!tpu.dma_semaphore, #tpu.memory_space<semaphore_mem>> -> memref<!tpu.dma_semaphore, #tpu.memory_space<semaphore_mem>>
      tpu.enqueue_dma source(%17 : memref<1x128xf32, #tpu.memory_space<any>>) target(%18 : memref<1x128xf32, #tpu.memory_space<vmem>>) target_semaphore(%20 : memref<!tpu.dma_semaphore, #tpu.memory_space<semaphore_mem>>)
    }
    %c8_i32_2 = arith.constant 8 : i32
    %c0_i32_3 = arith.constant 0 : i32
    %c8_i32_4 = arith.constant 8 : i32
    %4 = arith.addi %c0_i32_3, %c8_i32_4 : i32
    %c1_i32_5 = arith.constant 1 : i32
    scf.for %arg8 = %c0_i32_3 to %4 step %c1_i32_5  : i32 {
      %c1_i32_13 = arith.constant 1 : i32
      %12 = arith.muli %arg8, %c1_i32_13 : i32
      %c0_i32_14 = arith.constant 0 : i32
      %13 = arith.addi %c0_i32_14, %12 : i32
      %c0_i32_15 = arith.constant 0 : i32
      %c0_i32_16 = arith.constant 0 : i32
      %14 = tpu.memref_slice %arg4[%c0_i32_15, %c0_i32_16] : memref<64x128xf32, #tpu.memory_space<any>> -> memref<1x128xf32, #tpu.memory_space<any>>
      %c0_i32_17 = arith.constant 0 : i32
      %15 = tpu.memref_slice %arg6[%13, %c0_i32_17] : memref<8x128xf32, #tpu.memory_space<vmem>> -> memref<1x128xf32, #tpu.memory_space<vmem>>
      %16 = tpu.memref_slice %arg7[%13] : memref<8x!tpu.dma_semaphore, #tpu.memory_space<semaphore_mem>> -> memref<1x!tpu.dma_semaphore, #tpu.memory_space<semaphore_mem>>
      %17 = tpu.memref_squeeze %16 : memref<1x!tpu.dma_semaphore, #tpu.memory_space<semaphore_mem>> -> memref<!tpu.dma_semaphore, #tpu.memory_space<semaphore_mem>>
      tpu.wait_dma2 semaphore(%17 : memref<!tpu.dma_semaphore, #tpu.memory_space<semaphore_mem>>) src(%14 : memref<1x128xf32, #tpu.memory_space<any>>) dst(%15 : memref<1x128xf32, #tpu.memory_space<vmem>>)
    }
    %c8_i32_6 = arith.constant 8 : i32
    %c0 = arith.constant 0 : index
    %c0_7 = arith.constant 0 : index
    %5 = vector.load %arg6[%c0, %c0_7] : memref<8x128xf32, #tpu.memory_space<vmem>>, vector<8x128xf32>
    %cst = arith.constant 11.3137083 : f32
    %6 = vector.broadcast %cst : f32 to vector<8x128xf32>
    %7 = arith.mulf %5, %6 : vector<8x128xf32>
    %c0_8 = arith.constant 0 : index
    %c0_9 = arith.constant 0 : index
    %8 = vector.load %arg3[%c0_8, %c0_9] : memref<8x128xf32, #tpu.memory_space<vmem>>, vector<8x128xf32>
    %9 = arith.addf %7, %8 : vector<8x128xf32>
    %10 = vector.shape_cast %9 : vector<8x128xf32> to vector<1x8x128xf32>
    %c0_10 = arith.constant 0 : index
    %c0_11 = arith.constant 0 : index
    %c0_12 = arith.constant 0 : index
    %11 = vector.load %arg5[%c0_10, %c0_11, %c0_12] : memref<1x8x128xf32, #tpu.memory_space<vmem>>, vector<1x8x128xf32>
    tpu.vector_store %arg5[%c0_10, %c0_11, %c0_12], %10 {strides = array<i32>} : memref<1x8x128xf32, #tpu.memory_space<vmem>>, vector<1x8x128xf32>,
    return
  }
  func.func @transform_0(%arg0: i32, %arg1: i32, %arg2: memref<16xi32, #tpu.memory_space<smem>>) -> (i32, i32) {
    %c0_i32 = arith.constant 0 : i32
    %c0_i32_0 = arith.constant 0 : i32
    return %arg1, %c0_i32 : i32, i32
  }
  func.func @transform_2(%arg0: i32, %arg1: i32, %arg2: memref<16xi32, #tpu.memory_space<smem>>) -> (i32, i32, i32) {
    %c0_i32 = arith.constant 0 : i32
    %c0_i32_0 = arith.constant 0 : i32
    return %arg0, %arg1, %c0_i32 : i32, i32, i32
  }
}

</mosaic_0001>

<bundles_post_ra>
// kernel: tpu_custom_call.1
= control target key start
LH: loop header
LB: loop body
LE: loop exit
PB: predicated region body
PF: predicated region fallthrough
CT: control target
= control target key end

     0   :  { %s612_s15 = smov [#allocation5]   ;;  %s771_s0 = inlined_call_operand.hbm [shape: s32[16], index: 0, kind: input, shape index: {}]   ;;  %s772_s1 = inlined_call_operand.hbm [shape: f32[8,128], index: 1, kind: input, shape index: {}]   ;;  %s773_s2 = inlined_call_operand.hbm [shape: f32[64,128], index: 2, kind: input, shape index: {}]   ;;  %s774_s3 = inlined_call_operand.hbm [shape: f32[2,8,128], index: 3, kind: output, shape index: {}]  }
   0x1   :  { %s9_s14 = sshll.u32 %s771_s0, 4  ;;  %s10_s14 = int_to_ptr.hbm [resolvable:$true] %s9_s14 }
   0x2   :  { %12 = dma.hbm_to_smem %s10_s14, 16, %s612_s15, [#allocation4] }
   0x3   :  { %568 = dma.done.wait [#allocation4], 16 }
   0x4   :  { %569 = vsyncadd [#allocation4], 4294967280 }
   0x5   :  { %15 = sfence }
   0x6   :  { %16 = vsyncpa [#allocation7], 0 }
   0x7   :  { %17 = vsyncpa [#allocation8], 0 }
   0x8   :  { %19 = vsyncpa [#allocation8 + $0x1], 0  ;;  %s638_s16 = smov 0   ;;  %s640_s17 = smov 0  }
   0x9   :  { %s642_s18 = smov 0   ;;  %s644_s19 = smov 0  }
   0xa   :  { %s646_s20 = smov 0   ;;  %s648_s0 = smov 0  }
   0xb LB: > { %s339_s21 = sadd.s32 4294967295, %s602_s0   ;;  %s340_s22 = sadd.s32 4294967294, %s602_s0   ;;  %s602_s0 = sphi %s648_s0, %s25_s0   ;;  %s598_s20 = sphi %s646_s20, %s783_s20   ;;  %s594_s19 = sphi %s644_s19, %s782_s19   ;;  %s590_s18 = sphi %s642_s18, %s781_s18   ;;  %s586_s17 = sphi %s640_s17, %s780_s17   ;;  %s582_s16 = sphi %s638_s16, %s779_s16  }
   0xc   : > { %s37_s23 = sadd.s32 1, %s598_s20  ;;  %s72_s24 = sadd.s32 1, %s590_s18 }
   0xd   : > { %p39_p0 = scmp.ge.s32.totalorder %s37_s23, 2  ;;  %p82_p1 = scmp.ne.s32.totalorder %s590_s18, %s586_s17 }
   0xe   : > { %p83_p2 = scmp.eq.s32.totalorder %s339_s21, 1  ;;  %p88_p3 = scmp.ne.s32.totalorder %s586_s17, %s582_s16 }
   0xf   : > { %s785_s23 = smov (%p39_p0, %s37_s23), 0  ;;  %p89_p5 = scmp.eq.s32.totalorder %s340_s22, 1 }
  0x10   : > { %p678_p4 = por %p83_p2, %p82_p1  ;;  %s67_s26 = ssub.s32 %s598_s20, %s785_s23 }
  0x11   : > { %p341_p6 = scmp.ge.s32.totalorder %s602_s0, 1  ;;  %p70_p7 = scmp.eq.s32.totalorder %s67_s26, 0 }
  0x12   : > { %p685_p8 = por %p89_p5, %p88_p3  ;;  %p96_p9 = scmp.lt.s32.totalorder %s602_s0, 3 }
  0x13   : > { %s691_s28 = scalar_select %p70_p7, %s590_s18, %s72_s24  }
  0x14   : > { %p97_p10 = pnand %p341_p6, %p96_p9  ;;  %p373_p11 = scmp.eq.s32.totalorder %s339_s21, 0 }
  0x15   : > { %s110_s4 = sshll.u32 %s772_s1, 4  ;;  %s613_s5 = smov [#allocation6]   ;;  %s111_s4 = int_to_ptr.hbm [resolvable:$true] %s110_s4 }
  0x16   : > { %p365_p12 = pneg %p97_p10  ;;  %s112_s6 = sshll.u32 %s613_s5, 4  ;;  %s113_s6 = int_to_ptr.vmem [resolvable:$true] %s112_s6 }
  0x17   : > { %125 = sbr.rel (%p97_p10) target bundleno = 87 (0x57), region = 24 }
  0x18   : > { %p366_p13 = pnand %p373_p11, %p365_p12 }
  0x1a   : > { %368 = dma.hbm_to_vmem [thread:$0]  (!%p366_p13), %s111_s4, 128, %s113_s6, [#allocation7]  }
  0x1c   : > { %571 = dma.done.wait (%p373_p11), [#allocation7], 128  }
  0x1d   : > { %573 = vsyncadd (%p373_p11), [#allocation7], 4294967168  ;;  %s775_s7 = sand.u32 1, %s586_s17   ;;  %s346_s8 = sshll.u32 %s594_s19, 3 }
  0x1e   : > { %s700_s9 = sshll.u32 %s775_s7, 3  ;;  %s703_s11 = smov 0  }
  0x1f   : > { %s140_s10 = scalar_lea.vmem [#allocation9], %s700_s9 }
  0x20 LB: >> { %s150_s12 = sadd.s32 %s606_s11, %s346_s8  ;;  %s153_s14 = scalar_lea.vmem [#allocation2], %s606_s11  ;;  %s606_s11 = sphi %s703_s11, %s149_s11  }
  0x21   : >> { %s151_s13 = sld [smem:[#allocation5 + %s150_s12]]  ;;  %s712_s15 = sshll.u32 %s153_s14, 4  ;;  %s165_s15 = int_to_ptr.vmem [resolvable:$true] %s712_s15 }
  0x22   : >> { %s154_s29 = scalar_lea.sflag [#allocation3], %s606_s11  ;;  %s488_s12 = scalar_lea.hbm %s773_s2, 64 }
  0x27   : >> { %s152_s24 = scalar_lea.hbm %s773_s2, %s151_s13 }
  0x28   : >> { %s162_s26 = sshll.u32 %s152_s24, 4  ;;  %s163_s26 = int_to_ptr.hbm [resolvable:$true] %s162_s26 }
  0x29   : >> { %s484_s30 = sshra.s32 %s163_s26, 4  ;;  %s485_s30 = int_to_ptr.hbm [resolvable:$true] %s484_s30 }
  0x2a   : >> { %s486_s4 = scalar_lea.hbm %s485_s30, 1  ;;  %p489_p1 = scmp.lt.s32.totalorder %s485_s30, %s773_s2 }
  0x2b   : >> { %p487_p0 = scmp.ne.s32.totalorder %s485_s30, %s486_s4  ;;  %p490_p2 = scmp.lt.s32.totalorder %s488_s12, %s486_s4 }
  0x2d   : >> { %p491_p3 = por %p490_p2, %p489_p1 }
  0x2f   : >> { %p492_p5 = pnand %p491_p3, %p487_p0 }
  0x31   : >> { %495 = shalt.err (!%p492_p5)  }
  0x32   : >> { %s496_s13 = sshra.s32 %s165_s15, 4  ;;  %s614_s22 = smov [#allocation2]   ;;  %s497_s13 = int_to_ptr.vmem [resolvable:$true] %s496_s13 }
  0x33   : >> { %s498_s21 = scalar_lea.vmem %s497_s13, 1  ;;  %s500_s24 = scalar_lea.vmem %s614_s22, 8 }
  0x34   : >> { %p499_p6 = scmp.ne.s32.totalorder %s497_s13, %s498_s21  ;;  %p501_p7 = scmp.lt.s32.totalorder %s497_s13, [#allocation2] }
  0x35   : >> { %p502_p9 = scmp.lt.s32.totalorder %s500_s24, %s498_s21 }
  0x37   : >> { %p503_p10 = por %p502_p9, %p501_p7 }
  0x39   : >> { %p504_p11 = pnand %p503_p10, %p499_p6 }
  0x3b   : >> { %507 = shalt.err (!%p504_p11)  }
  0x3c   : >> { %167 = dma.hbm_to_vmem [thread:$0]  %s163_s26, 16, %s165_s15, %s154_s29 }
  0x3d   : >> { %s149_s11 = sadd.s32 1, %s606_s11  }
  0x3e   : >> { %p146_p12 = scmp.ge.s32.totalorder %s149_s11, 8  }
  0x3f   : > { %s608_s7 = smov (%p146_p12), 0  }
  0x40   : > { %148 = sbr.rel (!%p146_p12) target bundleno = 32 (0x20), region = 91 }
  0x45 LB: >> { %s174_s30 = scalar_lea.sflag [#allocation3], %s610_s7  ;;  %s610_s7 = sphi %s608_s7, %s173_s7  }
  0x46   : >> { %574 = dma.done.wait %s174_s30, 16 }
  0x47   : >> { %575 = vsyncadd %s174_s30, 4294967280  ;;  %s173_s7 = sadd.s32 1, %s610_s7  }
  0x48   : >> { %p170_p13 = scmp.ge.s32.totalorder %s173_s7, 8  }
  0x49   : > { %v178_v0 = vld [vmem:[#allocation2] sm:$0xff] (%p170_p13)  ;;  %v180_v1 = vld [vmem:[#allocation6] sm:$0xff] (%p170_p13)  ;;  %s195_s26 = scalar_lea.hbm (%p170_p13), %s774_s3, %s346_s8  ;;  %s197_s29 = sshll.u32 (%p170_p13), %s140_s10, 4  ;;  %s198_s29 = int_to_ptr.vmem [resolvable:$true] %s197_s29 }
  0x4a   : > { %172 = sbr.rel (!%p170_p13) target bundleno = 69 (0x45), region = 102  ;;  %v179_v2 = vmul.f32 (%p170_p13), 11.313708, %v178_v0  ;;  %s199_s4 = sshll.u32 (%p170_p13), %s195_s26, 4  ;;  %s200_s4 = int_to_ptr.hbm [resolvable:$true] %s199_s4 }
  0x4b   : > { %s778_s5 = sand.u32 (%p170_p13), 1, %s586_s17   ;;  %s522_s12 = sshra.s32 (%p170_p13), %s200_s4, 4  ;;  %s523_s12 = int_to_ptr.hbm [resolvable:$true] %s522_s12 }
  0x4c   : > { %v181_v3 = vadd.f32 (%p170_p13), %v180_v1, %v179_v2  ;;  %s184_s6 = scalar_lea.sflag (%p170_p13), [#allocation8], %s778_s5  ;;  %s524_s14 = scalar_lea.hbm (%p170_p13), %s523_s12, 8 }
  0x4d   : > { %p525_p0 = scmp.ne.s32.totalorder (%p170_p13), %s523_s12, %s524_s14  ;;  %s528_s13 = scalar_lea.hbm (%p170_p13), %s774_s3, 16 }
  0x4e   : > { %182 = vst [vmem:[%s140_s10] sm:$0xff] (%p170_p13), %v181_v3  ;;  %p529_p3 = scmp.lt.s32.totalorder (%p170_p13), %s523_s12, %s774_s3  ;;  %p530_p5 = scmp.lt.s32.totalorder (%p170_p13), %s528_s13, %s524_s14 }
  0x4f   : > { %p526_p1 = pnand %p525_p0, %p678_p4 }
  0x50   : > { %p531_p6 = por %p530_p5, %p529_p3 }
  0x51   : > { %p527_p2 = pneg %p526_p1 }
  0x53   : > { %p532_p7 = pnand %p531_p6, %p527_p2 }
  0x55   : > { %535 = shalt.err (!%p532_p7)
}
  0x56   : > { %363 = dma.vmem_to_hbm [thread:$0]  (%p678_p4), %s198_s29, 128, %s200_s4, %s184_s6  }
  0x57 PF: > { %p375_p9 = scmp.ge.s32.totalorder %s602_s0, 2  ;;  %s211_s9 = sand.u32 1, %s582_s16  }
  0x58   : > { %s212_s10 = scalar_lea.sflag [#allocation8], %s211_s9 }
  0x59   : > { %p370_p10 = pnand %p375_p9, %p685_p8 }
  0x5b   : > { %p371_p11 = pneg %p370_p10 }
  0x5d   : > { %577 = dma.done.wait (%p371_p11), %s212_s10, 128  }
  0x5e   : > { %579 = vsyncadd (%p371_p11), %s212_s10, 4294967168  ;;  %s25_s0 = sadd.s32 1, %s602_s0   ;;  %s779_s16 = smov %s586_s17 }
  0x5f   : > { %p22_p12 = scmp.ge.s32.totalorder %s25_s0, 4   ;;  %s780_s17 = smov %s590_s18 }
  0x60   : > { %s781_s18 = smov %s691_s28  ;;  %s782_s19 = smov %s598_s20 }
  0x61   : > { %s783_s20 = smov %s785_s23  ;;  %24 = sbr.rel (!%p22_p12) target bundleno = 11 (0xb), region = 113 }
  0x66   :  { %218 = vsyncpa [#allocation7], 1 }
  0x67   :  { %220 = vsyncpa [#allocation7 + $0x1], 1 }
  0x68   :  { %221 = vsyncpa [#allocation8], 1 }
  0x69   :  { %223 = vsyncpa [#allocation8 + $0x1], 1 }
  0x6a   :  { %224 = vsyncmov [#allocation3] }
  0x6d   :  { %s225_s25 = vpop.sfrf %224 }
  0x6e   :  { %p351_p4 = scmp.ne.s32.totalorder %s225_s25, 0 }
  0x70   :  { %229 = shalt.err (%p351_p4)  }
  0x71   :  { %231 = vsyncmov [#allocation3 + $0x1] }
  0x74   :  { %s232_s27 = vpop.sfrf %231 }
  0x75   :  { %p352_p8 = scmp.ne.s32.totalorder %s232_s27, 0 }
  0x77   :  { %236 = shalt.err (%p352_p8)  }
  0x78   :  { %238 = vsyncmov [#allocation3 + $0x2] }
  0x7b   :  { %s239_s28 = vpop.sfrf %238 }
  0x7c   :  { %p353_p13 = scmp.ne.s32.totalorder %s239_s28, 0 }
  0x7e   :  { %243 = shalt.err (%p353_p13)  }
  0x7f   :  { %245 = vsyncmov [#allocation3 + $0x3] }
  0x82   :  { %s246_s23 = vpop.sfrf %245 }
  0x83   :  { %p354_p0 = scmp.ne.s32.totalorder %s246_s23, 0 }
  0x85   :  { %250 = shalt.err (%p354_p0)  }
  0x86   :  { %252 = vsyncmov [#allocation3 + $0x4] }
  0x89   :  { %s253_s1 = vpop.sfrf %252 }
  0x8a   :  { %p355_p1 = scmp.ne.s32.totalorder %s253_s1, 0 }
  0x8c   :  { %257 = shalt.err (%p355_p1)  }
  0x8d   :  { %259 = vsyncmov [#allocation3 + $0x5] }
  0x90   :  { %s260_s2 = vpop.sfrf %259 }
  0x91   :  { %p356_p2 = scmp.ne.s32.totalorder %s260_s2, 0 }
  0x93   :  { %264 = shalt.err (%p356_p2)  }
  0x94   :  { %266 = vsyncmov [#allocation3 + $0x6] }
  0x97   :  { %s267_s3 = vpop.sfrf %266 }
  0x98   :  { %p357_p3 = scmp.ne.s32.totalorder %s267_s3, 0 }
  0x9a   :  { %271 = shalt.err (%p357_p3)  }
  0x9b   :  { %273 = vsyncmov [#allocation3 + $0x7] }
  0x9e   :  { %s274_s16 = vpop.sfrf %273 }
  0x9f   :  { %p358_p5 = scmp.ne.s32.totalorder %s274_s16, 0 }
  0xa1   :  { %278 = shalt.err (%p358_p5)  }

</bundles_post_ra>
